<compile_context>
chip_gen: v5e
topology: v5e:2x2
jax: 0.10.0
libtpu: 0.0.40
codegen_flags: <defaults>
</compile_context>

<pallas_src>
import jax
import jax.numpy as jnp
from jax import lax
from jax.experimental import pallas as pl
from jax.experimental.pallas import tpu as pltpu

LANES = 128  # vreg lane width; batch elements live on lanes


def mlp_kernel(p_ref, x_ref, o_ref):
    # p_ref: SMEM (9,) f32 packed params:
    #   [w1_00, w1_01, w1_10, w1_11, b1_0, b1_1, w2_00, w2_01, b2_0]
    # x_ref: VMEM (2, 128) f32; sublane j holds input feature j, lanes = batch.
    # o_ref: VMEM (1, 128) f32; lane b holds the output for batch element b.
    x0 = x_ref[0:1, :]                                   # (1, 128)
    x1 = x_ref[1:2, :]                                   # (1, 128)

    # Hidden layer: h_j = relu(x0 * W1[j,0] + x1 * W1[j,1] + b1[j])   (VPU only)
    h0 = jnp.maximum(x0 * p_ref[0] + x1 * p_ref[1] + p_ref[4], 0.0)
    h1 = jnp.maximum(x0 * p_ref[2] + x1 * p_ref[3] + p_ref[5], 0.0)

    # Output layer: y = h0 * W2[0,0] + h1 * W2[0,1] + b2
    y = h0 * p_ref[6] + h1 * p_ref[7] + p_ref[8]

    o_ref[...] = y.astype(o_ref.dtype)                   # full-lane (lane-dense) store


def pack_params(w1, b1, w2, b2):
    """Init-time packing of all 9 parameters into one flat f32 vector (done once)."""
    return jnp.concatenate(
        [w1.reshape(-1), b1.reshape(-1), w2.reshape(-1), b2.reshape(-1)]
    ).astype(jnp.float32)


def nn_forward(params, x):
    """Forward pass of the PyTorch NN: squeeze(relu(x @ W1^T + b1) @ W2^T + b2).

    `params` is the pre-packed (9,) vector from pack_params (constant across calls).
    """
    B, f_in = x.shape
    assert f_in == 2, "kernel is specialized to 2 input features"
    assert B <= LANES, "batch lives on the lane axis; add a grid for B > 128"

    # Lane-dense layout: batch on lanes, features on sublanes.
    # One transpose + one pad (instead of zeros + transpose + dynamic-update-slice).
    xt = lax.pad(
        x.T.astype(jnp.float32),
        jnp.float32(0.0),
        ((0, 0, 0), (0, LANES - B, 0)),
    )                                                    # (2, 128)

    y = pl.pallas_call(
        mlp_kernel,
        out_shape=jax.ShapeDtypeStruct((1, LANES), jnp.float32),
        in_specs=[
            pl.BlockSpec(memory_space=pltpu.MemorySpace.SMEM),  # packed params
            pl.BlockSpec(memory_space=pltpu.MemorySpace.VMEM),  # x (feat x lanes)
        ],
        out_specs=pl.BlockSpec(memory_space=pltpu.MemorySpace.VMEM),
    )(params, xt)

    out = y[0, :B]          # (B,)  -- matches torch.squeeze on (B, 1) for B > 1
    if B == 1:
        out = out[0]        # torch.squeeze also drops the batch dim when B == 1
    return out


if __name__ == "__main__":
    key = jax.random.PRNGKey(0)
    k1, k2, k3, k4 = jax.random.split(key, 4)

    # Deterministic init mimicking nn.Linear's U(-1/sqrt(fan_in), 1/sqrt(fan_in)).
    bound = 1.0 / jnp.sqrt(2.0)
    w1 = jax.random.uniform(k1, (2, 2), jnp.float32, -bound, bound)  # dense1.weight
    b1 = jax.random.uniform(k2, (2,), jnp.float32, -bound, bound)    # dense1.bias
    w2 = jax.random.uniform(k3, (1, 2), jnp.float32, -bound, bound)  # dense2.weight
    b2 = jax.random.uniform(k4, (1,), jnp.float32, -bound, bound)    # dense2.bias

    # Init-time parameter packing (amortized across all forward calls).
    params = jax.block_until_ready(pack_params(w1, b1, w2, b2))

    # Canonical XOR input batch (4, 2).
    x = jnp.array([[0.0, 0.0],
                   [0.0, 1.0],
                   [1.0, 0.0],
                   [1.0, 1.0]], dtype=jnp.float32)

    fwd = jax.jit(nn_forward)
    out = jax.block_until_ready(fwd(params, x))

    # Pure-JAX reference check.
    ref = jnp.squeeze(jnp.maximum(x @ w1.T + b1, 0.0) @ w2.T + b2, axis=-1)
    assert out.shape == (4,), out.shape
    assert jnp.allclose(out, ref, atol=1e-5, rtol=1e-5), (out, ref)

    print("KERNEL_OK")
</pallas_src>

<mosaic_0001>
module attributes {stable_mosaic.version = 11 : i64} {
  func.func @mlp_kernel(%arg0: memref<9xf32, #tpu.memory_space<smem>>, %arg1: memref<2x128xf32, #tpu.memory_space<vmem>>, %arg2: memref<1x128xf32, #tpu.memory_space<vmem>>) attributes {dimension_semantics = [], scalar_prefetch = 0 : i64, scratch_operands = 0 : i64, tpu.core_type = #tpu.core_type<tc>} {
    %c0 = arith.constant 0 : index
    %c0_0 = arith.constant 0 : index
    %0 = vector.load %arg1[%c0, %c0_0] : memref<2x128xf32, #tpu.memory_space<vmem>>, vector<1x128xf32>
    %c1 = arith.constant 1 : index
    %c0_1 = arith.constant 0 : index
    %1 = vector.load %arg1[%c1, %c0_1] : memref<2x128xf32, #tpu.memory_space<vmem>>, vector<1x128xf32>
    %c0_2 = arith.constant 0 : index
    %2 = memref.load %arg0[%c0_2] : memref<9xf32, #tpu.memory_space<smem>>
    %3 = vector.broadcast %2 : f32 to vector<1x128xf32>
    %4 = arith.mulf %0, %3 : vector<1x128xf32>
    %c1_3 = arith.constant 1 : index
    %5 = memref.load %arg0[%c1_3] : memref<9xf32, #tpu.memory_space<smem>>
    %6 = vector.broadcast %5 : f32 to vector<1x128xf32>
    %7 = arith.mulf %1, %6 : vector<1x128xf32>
    %8 = arith.addf %4, %7 : vector<1x128xf32>
    %c4 = arith.constant 4 : index
    %9 = memref.load %arg0[%c4] : memref<9xf32, #tpu.memory_space<smem>>
    %10 = vector.broadcast %9 : f32 to vector<1x128xf32>
    %11 = arith.addf %8, %10 : vector<1x128xf32>
    %cst = arith.constant 0.000000e+00 : f32
    %12 = vector.broadcast %cst : f32 to vector<1x128xf32>
    %13 = arith.maximumf %11, %12 : vector<1x128xf32>
    %c2 = arith.constant 2 : index
    %14 = memref.load %arg0[%c2] : memref<9xf32, #tpu.memory_space<smem>>
    %15 = vector.broadcast %14 : f32 to vector<1x128xf32>
    %16 = arith.mulf %0, %15 : vector<1x128xf32>
    %c3 = arith.constant 3 : index
    %17 = memref.load %arg0[%c3] : memref<9xf32, #tpu.memory_space<smem>>
    %18 = vector.broadcast %17 : f32 to vector<1x128xf32>
    %19 = arith.mulf %1, %18 : vector<1x128xf32>
    %20 = arith.addf %16, %19 : vector<1x128xf32>
    %c5 = arith.constant 5 : index
    %21 = memref.load %arg0[%c5] : memref<9xf32, #tpu.memory_space<smem>>
    %22 = vector.broadcast %21 : f32 to vector<1x128xf32>
    %23 = arith.addf %20, %22 : vector<1x128xf32>
    %cst_4 = arith.constant 0.000000e+00 : f32
    %24 = vector.broadcast %cst_4 : f32 to vector<1x128xf32>
    %25 = arith.maximumf %23, %24 : vector<1x128xf32>
    %c6 = arith.constant 6 : index
    %26 = memref.load %arg0[%c6] : memref<9xf32, #tpu.memory_space<smem>>
    %27 = vector.broadcast %26 : f32 to vector<1x128xf32>
    %28 = arith.mulf %13, %27 : vector<1x128xf32>
    %c7 = arith.constant 7 : index
    %29 = memref.load %arg0[%c7] : memref<9xf32, #tpu.memory_space<smem>>
    %30 = vector.broadcast %29 : f32 to vector<1x128xf32>
    %31 = arith.mulf %25, %30 : vector<1x128xf32>
    %32 = arith.addf %28, %31 : vector<1x128xf32>
    %c8 = arith.constant 8 : index
    %33 = memref.load %arg0[%c8] : memref<9xf32, #tpu.memory_space<smem>>
    %34 = vector.broadcast %33 : f32 to vector<1x128xf32>
    %35 = arith.addf %32, %34 : vector<1x128xf32>
    %c0_5 = arith.constant 0 : index
    %c0_6 = arith.constant 0 : index
    %36 = vector.load %arg2[%c0_5, %c0_6] : memref<1x128xf32, #tpu.memory_space<vmem>>, vector<1x128xf32>
    tpu.vector_store %arg2[%c0_5, %c0_6], %35 {strides = array<i32>} : memref<1x128xf32, #tpu.memory_space<vmem>>, vector<1x128xf32>,
    return
  }
}

</mosaic_0001>

<bundles_post_ra>
// kernel: nn_forward.1
= control target key start
LH: loop header
LB: loop body
LE: loop exit
PB: predicated region body
PF: predicated region fallthrough
CT: control target
= control target key end

     0   :  { %7 = vsyncpa [#allocation3], 0  ;;  %s87_s12 = smov [#allocation2]   ;;  %s115_s0 = inlined_call_operand.vmem [shape: f32[9], index: 0, kind: input, shape index: {}]   ;;  %s116_s1 = inlined_call_operand.vmem [shape: f32[2,128], index: 1, kind: input, shape index: {}]   ;;  %s117_s2 = inlined_call_operand.vmem [shape: f32[1,128], index: 2, kind: output, shape index: {}]  }
   0x1   :  { %s13_s11 = sshll.u32 %s115_s0, 4  ;;  %s14_s11 = int_to_ptr.vmem [resolvable:$true] %s13_s11 }
   0x2   :  { %16 = dma.vmem_to_smem %s14_s11, 16, %s87_s12, [#allocation3]  }
   0x3   :  { %85 = dma.done.wait [#allocation3], 16  }
   0x4   :  { %86 = vsyncadd [#allocation3], 4294967280 }
   0x5   :  { %23 = sfence }
   0x6   :  { %s26_s13 = sld [smem:[#allocation2]]  ;;  %v24_v0 = vld [vmem:[%s116_s1] sm:$0x1]  ;;  %v25_v1 = vld [vmem:[%s116_s1 + $0x1] sm:$0x1] }
   0x7   :  { %s64_s14 = sld [smem:[#allocation2 + $0x1]] }
   0x8   :  { %s65_s15 = sld [smem:[#allocation2 + $0x4]] }
   0x9   :  { %s66_s16 = sld [smem:[#allocation2 + $0x2]] }
   0xa   :  { %s67_s19 = sld [smem:[#allocation2 + $0x3]] }
   0xb   :  { %s68_s0 = sld [smem:[#allocation2 + $0x5]] }
   0xc   :  { %v27_v2 = vstv %s26_s13  ;;  %s69_s22 = sld [smem:[#allocation2 + $0x6]] }
   0xd   :  { %v28_v3 = vmul.f32 %v27_v2, %v24_v0  ;;  %v30_v4 = vstv %s64_s14  ;;  %s70_s23 = sld [smem:[#allocation2 + $0x7]] }
   0xe   :  { %v31_v5 = vmul.f32 %v30_v4, %v25_v1  ;;  %v34_v6 = vstv %s65_s15  ;;  %s71_s24 = sld [smem:[#allocation2 + $0x8]] }
   0xf   :  { %v38_v7 = vstv %s66_s16 }
  0x10   :  { %v32_v8 = vadd.f32 %v31_v5, %v28_v3  ;;  %v39_v9 = vmul.f32 %v38_v7, %v24_v0  ;;  %v41_v10 = vstv %s67_s19 }
  0x11   :  { %v42_v11 = vmul.f32 %v41_v10, %v25_v1  ;;  %v45_v13 = vstv %s68_s0 }
  0x12   :  { %v35_v12 = vadd.f32 %v34_v6, %v32_v8  ;;  %v49_v16 = vstv %s69_s22 }
  0x13   :  { %v43_v14 = vadd.f32 %v42_v11, %v39_v9  ;;  %v52_v18 = vstv %s70_s23 }
  0x14   :  { %v36_v15 = vmax.f32 %v35_v12, 0.0  ;;  %v56_v22 = vstv %s71_s24 }
  0x15   :  { %v46_v17 = vadd.f32 %v45_v13, %v43_v14 }
  0x16   :  { %v50_v20 = vmul.f32 %v49_v16, %v36_v15 }
  0x17   :  { %v47_v19 = vmax.f32 %v46_v17, 0.0 }
  0x19   :  { %v53_v21 = vmul.f32 %v52_v18, %v47_v19 }
  0x1b   :  { %v54_v23 = vadd.f32 %v53_v21, %v50_v20 }
  0x1d   :  { %v57_v24 = vadd.f32 %v56_v22, %v54_v23 }
  0x1f   :  { %58 = vst [vmem:[%s117_s2] sm:$0x1] %v57_v24 }
  0x20   :  { %63 = vsyncpa [#allocation3], 1 }

</bundles_post_ra>
